<compile_context>
chip_gen: v5e
topology: v5e:2x2
jax: 0.10.0
libtpu: 0.0.40
codegen_flags: <defaults>
</compile_context>

<pallas_src>
import jax
import jax.numpy as jnp
from jax.experimental import pallas as pl
from jax.experimental.pallas import tpu as pltpu


def _critic_kernel(s_ref, a_ref, w1_ref, b1_ref, w2q_ref, w2a_ref, b2_ref,
                   w3_ref, b3_ref, out_ref):
    # Layer 1: states -> 400, ReLU.  bf16 operands on the MXU, f32 accumulate.
    s = s_ref[...].astype(jnp.bfloat16)
    h1 = jnp.dot(s, w1_ref[...], preferred_element_type=jnp.float32)
    h1 = jnp.maximum(h1 + b1_ref[...], 0.0)                     # f32 VPU

    # Layer 2: cat([h1, actions]) -> 300, ReLU (concat folded into two matmuls).
    a = a_ref[...].astype(jnp.bfloat16)
    h2 = jnp.dot(h1.astype(jnp.bfloat16), w2q_ref[...],
                 preferred_element_type=jnp.float32)
    h2 = h2 + jnp.dot(a, w2a_ref[...], preferred_element_type=jnp.float32)
    h2 = jnp.maximum(h2 + b2_ref[...], 0.0)                     # f32 VPU

    # Layer 3: 300 -> 1.  N=1 matmul wastes the MXU; do VPU mul + lane reduce.
    # w3 is stored as a (1, 300) f32 row.
    q = jnp.sum(h2 * w3_ref[...], axis=-1, keepdims=True)
    out_ref[...] = (q + b3_ref[...]).astype(out_ref.dtype)


def critic_forward(states, actions, kparams, *, block_b=512):
    """states: (B, state_dim) f32; actions: (B, action_dim) f32 -> (B, 1) f32.

    kparams = prepare_critic_params(init_critic_params(...)).
    """
    w1, b1, w2q, w2a, b2, w3, b3 = kparams
    B, state_dim = states.shape
    action_dim = actions.shape[1]

    # Batch tile: whole (small) batch or block_b rows, rounded to 8 sublanes.
    tb = min(block_b, max(B, 8))
    tb = ((tb + 7) // 8) * 8
    n_blocks = pl.cdiv(B, tb)
    Bp = n_blocks * tb
    if Bp != B:
        pad = Bp - B
        states = jnp.pad(states, ((0, pad), (0, 0)))
        actions = jnp.pad(actions, ((0, pad), (0, 0)))

    def batch_spec(feat):
        # Streams along the batch grid axis.
        return pl.BlockSpec((tb, feat), lambda i: (i, 0))

    def const_spec(shape):
        # Same block index every iteration -> weights stay resident in VMEM.
        return pl.BlockSpec(shape, lambda i: (0, 0))

    out = pl.pallas_call(
        _critic_kernel,
        out_shape=jax.ShapeDtypeStruct((Bp, 1), jnp.float32),
        grid=(n_blocks,),
        in_specs=[
            batch_spec(state_dim),      # states
            batch_spec(action_dim),     # actions
            const_spec(w1.shape),       # (state_dim, 400) bf16
            const_spec(b1.shape),       # (1, 400) f32
            const_spec(w2q.shape),      # (400, 300) bf16
            const_spec(w2a.shape),      # (action_dim, 300) bf16
            const_spec(b2.shape),       # (1, 300) f32
            const_spec(w3.shape),       # (1, 300) f32
            const_spec(b3.shape),       # (1, 1) f32
        ],
        out_specs=batch_spec(1),
        compiler_params=pltpu.CompilerParams(
            dimension_semantics=("parallel",)),   # split batch tiles on v7x's 2 TCs
    )(states, actions, w1, b1, w2q, w2a, b2, w3, b3)

    return out[:B] if Bp != B else out


def init_critic_params(key, state_dim, action_dim, h1=400, h2=300):
    """Master (f32) params matching torch.nn.init.uniform_(-0.003, 0.003).

    Weights are generated directly in (in, out) layout (transposed nn.Linear);
    the uniform distribution is symmetric so this is statistically identical.
    The l2 weight is split into the rows that multiply q and those that
    multiply actions (== folding the concat).
    """
    ks = jax.random.split(key, 6)
    u = lambda k, shape: jax.random.uniform(
        k, shape, dtype=jnp.float32, minval=-0.003, maxval=0.003)
    w1 = u(ks[0], (state_dim, h1))
    b1 = u(ks[1], (1, h1))
    w2 = u(ks[2], (h1 + action_dim, h2))
    b2 = u(ks[3], (1, h2))
    w3 = u(ks[4], (h2, 1))
    b3 = u(ks[5], (1, 1))
    w2q, w2a = w2[:h1, :], w2[h1:, :]
    return (w1, b1, w2q, w2a, b2, w3, b3)


def prepare_critic_params(params):
    """Kernel storage layout: bf16 weight matrices (half the HBM weight bytes),
    f32 biases, and w3 as a (1, 300) f32 row for the VPU/XLU head."""
    w1, b1, w2q, w2a, b2, w3, b3 = params
    return (w1.astype(jnp.bfloat16), b1,
            w2q.astype(jnp.bfloat16), w2a.astype(jnp.bfloat16), b2,
            w3.reshape(1, -1), b3)


def critic_reference(states, actions, kparams):
    """Pure-JAX reference mirroring the kernel's bf16-weight math."""
    w1, b1, w2q, w2a, b2, w3, b3 = kparams
    s = states.astype(jnp.bfloat16)
    a = actions.astype(jnp.bfloat16)
    h1 = jnp.maximum(
        jnp.dot(s, w1, preferred_element_type=jnp.float32) + b1, 0.0)
    h2 = (jnp.dot(h1.astype(jnp.bfloat16), w2q,
                  preferred_element_type=jnp.float32)
          + jnp.dot(a, w2a, preferred_element_type=jnp.float32))
    h2 = jnp.maximum(h2 + b2, 0.0)
    return jnp.sum(h2 * w3, axis=-1, keepdims=True) + b3


if __name__ == "__main__":
    state_dim, action_dim, batch = 16, 4, 8

    key = jax.random.PRNGKey(0)
    k_params, k_s, k_a = jax.random.split(key, 3)

    master = init_critic_params(k_params, state_dim, action_dim)
    kparams = prepare_critic_params(master)

    states = jax.random.normal(k_s, (batch, state_dim), dtype=jnp.float32)
    actions = jax.random.normal(k_a, (batch, action_dim), dtype=jnp.float32)

    out = critic_forward(states, actions, kparams)
    out = jax.block_until_ready(out)

    ref = critic_reference(states, actions, kparams)
    assert out.shape == (batch, 1), out.shape
    assert jnp.allclose(out, ref, atol=1e-4, rtol=1e-2), (out, ref)

    print("KERNEL_OK")
</pallas_src>

<mosaic_0001>
module attributes {stable_mosaic.version = 11 : i64} {
  func.func @_critic_kernel(%arg0: i32, %arg1: memref<8x16xf32, #tpu.memory_space<vmem>>, %arg2: memref<8x4xf32, #tpu.memory_space<vmem>>, %arg3: memref<16x400xbf16, #tpu.memory_space<vmem>>, %arg4: memref<1x400xf32, #tpu.memory_space<vmem>>, %arg5: memref<400x300xbf16, #tpu.memory_space<vmem>>, %arg6: memref<4x300xbf16, #tpu.memory_space<vmem>>, %arg7: memref<1x300xf32, #tpu.memory_space<vmem>>, %arg8: memref<1x300xf32, #tpu.memory_space<vmem>>, %arg9: memref<1x1xf32, #tpu.memory_space<vmem>>, %arg10: memref<8x1xf32, #tpu.memory_space<vmem>>) attributes {dimension_semantics = [#tpu.dimension_semantics<parallel>], iteration_bounds = array<i64: 1>, scalar_prefetch = 0 : i64, scratch_operands = 0 : i64, tpu.core_type = #tpu.core_type<tc>, window_params = [{transform_indices = @transform_0, window_bounds = array<i64: 8, 16>}, {transform_indices = @transform_1, window_bounds = array<i64: 8, 4>}, {pipeline_mode = #tpu.pipeline_mode<synchronous>, transform_indices = @transform_2, window_bounds = array<i64: 16, 400>}, {pipeline_mode = #tpu.pipeline_mode<synchronous>, transform_indices = @transform_3, window_bounds = array<i64: 1, 400>}, {pipeline_mode = #tpu.pipeline_mode<synchronous>, transform_indices = @transform_4, window_bounds = array<i64: 400, 300>}, {pipeline_mode = #tpu.pipeline_mode<synchronous>, transform_indices = @transform_5, window_bounds = array<i64: 4, 300>}, {pipeline_mode = #tpu.pipeline_mode<synchronous>, transform_indices = @transform_6, window_bounds = array<i64: 1, 300>}, {pipeline_mode = #tpu.pipeline_mode<synchronous>, transform_indices = @transform_7, window_bounds = array<i64: 1, 300>}, {pipeline_mode = #tpu.pipeline_mode<synchronous>, transform_indices = @transform_8, window_bounds = array<i64: 1, 1>}, {transform_indices = @transform_9, window_bounds = array<i64: 8, 1>}]} {
    %c0 = arith.constant 0 : index
    %c0_0 = arith.constant 0 : index
    %0 = vector.load %arg1[%c0, %c0_0] : memref<8x16xf32, #tpu.memory_space<vmem>>, vector<8x16xf32>
    %1 = arith.truncf %0 : vector<8x16xf32> to vector<8x16xbf16>
    %c0_1 = arith.constant 0 : index
    %c0_2 = arith.constant 0 : index
    %2 = vector.load %arg3[%c0_1, %c0_2] : memref<16x400xbf16, #tpu.memory_space<vmem>>, vector<16x400xbf16>
    %cst = arith.constant dense<0.000000e+00> : vector<8x400xf32>
    %3 = tpu.matmul %1, %2, %cst {dimension_numbers = #tpu.dot_dimension_numbers<[1], [0], [0], [1], [0, 0, 1, 1], [], []>} : vector<8x16xbf16>, vector<16x400xbf16>, vector<8x400xf32> -> vector<8x400xf32>
    %c0_3 = arith.constant 0 : index
    %c0_4 = arith.constant 0 : index
    %4 = vector.load %arg4[%c0_3, %c0_4] : memref<1x400xf32, #tpu.memory_space<vmem>>, vector<1x400xf32>
    %5 = vector.broadcast %4 : vector<1x400xf32> to vector<8x400xf32>
    %6 = arith.addf %3, %5 : vector<8x400xf32>
    %cst_5 = arith.constant 0.000000e+00 : f32
    %7 = vector.broadcast %cst_5 : f32 to vector<8x400xf32>
    %8 = arith.maximumf %6, %7 : vector<8x400xf32>
    %c0_6 = arith.constant 0 : index
    %c0_7 = arith.constant 0 : index
    %9 = vector.load %arg2[%c0_6, %c0_7] : memref<8x4xf32, #tpu.memory_space<vmem>>, vector<8x4xf32>
    %10 = arith.truncf %9 : vector<8x4xf32> to vector<8x4xbf16>
    %11 = arith.truncf %8 : vector<8x400xf32> to vector<8x400xbf16>
    %c0_8 = arith.constant 0 : index
    %c0_9 = arith.constant 0 : index
    %12 = vector.load %arg5[%c0_8, %c0_9] : memref<400x300xbf16, #tpu.memory_space<vmem>>, vector<400x300xbf16>
    %cst_10 = arith.constant dense<0.000000e+00> : vector<8x300xf32>
    %13 = tpu.matmul %11, %12, %cst_10 {dimension_numbers = #tpu.dot_dimension_numbers<[1], [0], [0], [1], [0, 0, 1, 1], [], []>} : vector<8x400xbf16>, vector<400x300xbf16>, vector<8x300xf32> -> vector<8x300xf32>
    %c0_11 = arith.constant 0 : index
    %c0_12 = arith.constant 0 : index
    %14 = vector.load %arg6[%c0_11, %c0_12] : memref<4x300xbf16, #tpu.memory_space<vmem>>, vector<4x300xbf16>
    %cst_13 = arith.constant dense<0.000000e+00> : vector<8x300xf32>
    %15 = tpu.matmul %10, %14, %cst_13 {dimension_numbers = #tpu.dot_dimension_numbers<[1], [0], [0], [1], [0, 0, 1, 1], [], []>} : vector<8x4xbf16>, vector<4x300xbf16>, vector<8x300xf32> -> vector<8x300xf32>
    %16 = arith.addf %13, %15 : vector<8x300xf32>
    %c0_14 = arith.constant 0 : index
    %c0_15 = arith.constant 0 : index
    %17 = vector.load %arg7[%c0_14, %c0_15] : memref<1x300xf32, #tpu.memory_space<vmem>>, vector<1x300xf32>
    %18 = vector.broadcast %17 : vector<1x300xf32> to vector<8x300xf32>
    %19 = arith.addf %16, %18 : vector<8x300xf32>
    %cst_16 = arith.constant 0.000000e+00 : f32
    %20 = vector.broadcast %cst_16 : f32 to vector<8x300xf32>
    %21 = arith.maximumf %19, %20 : vector<8x300xf32>
    %c0_17 = arith.constant 0 : index
    %c0_18 = arith.constant 0 : index
    %22 = vector.load %arg8[%c0_17, %c0_18] : memref<1x300xf32, #tpu.memory_space<vmem>>, vector<1x300xf32>
    %23 = vector.broadcast %22 : vector<1x300xf32> to vector<8x300xf32>
    %24 = arith.mulf %21, %23 : vector<8x300xf32>
    %cst_19 = arith.constant dense<0.000000e+00> : vector<8xf32>
    %25 = vector.multi_reduction <add>, %24, %cst_19 [1] : vector<8x300xf32> to vector<8xf32>
    %26 = vector.shape_cast %25 : vector<8xf32> to vector<8x1xf32>
    %c0_20 = arith.constant 0 : index
    %c0_21 = arith.constant 0 : index
    %27 = vector.load %arg9[%c0_20, %c0_21] : memref<1x1xf32, #tpu.memory_space<vmem>>, vector<1x1xf32>
    %28 = vector.broadcast %27 : vector<1x1xf32> to vector<8x1xf32>
    %29 = arith.addf %26, %28 : vector<8x1xf32>
    %c0_22 = arith.constant 0 : index
    %c0_23 = arith.constant 0 : index
    %30 = vector.load %arg10[%c0_22, %c0_23] : memref<8x1xf32, #tpu.memory_space<vmem>>, vector<8x1xf32>
    tpu.vector_store %arg10[%c0_22, %c0_23], %29 {strides = array<i32>} : memref<8x1xf32, #tpu.memory_space<vmem>>, vector<8x1xf32>,
    return
  }
  func.func @transform_0(%arg0: i32) -> (i32, i32) {
    %c0_i32 = arith.constant 0 : i32
    %c0_i32_0 = arith.constant 0 : i32
    return %arg0, %c0_i32 : i32, i32
  }
  func.func @transform_1(%arg0: i32) -> (i32, i32) {
    %c0_i32 = arith.constant 0 : i32
    %c0_i32_0 = arith.constant 0 : i32
    return %arg0, %c0_i32 : i32, i32
  }
  func.func @transform_2(%arg0: i32) -> (i32, i32) {
    %c0_i32 = arith.constant 0 : i32
    %c0_i32_0 = arith.constant 0 : i32
    %c0_i32_1 = arith.constant 0 : i32
    return %c0_i32, %c0_i32_0 : i32, i32
  }
  func.func @transform_3(%arg0: i32) -> (i32, i32) {
    %c0_i32 = arith.constant 0 : i32
    %c0_i32_0 = arith.constant 0 : i32
    %c0_i32_1 = arith.constant 0 : i32
    return %c0_i32, %c0_i32_0 : i32, i32
  }
  func.func @transform_4(%arg0: i32) -> (i32, i32) {
    %c0_i32 = arith.constant 0 : i32
    %c0_i32_0 = arith.constant 0 : i32
    %c0_i32_1 = arith.constant 0 : i32
    return %c0_i32, %c0_i32_0 : i32, i32
  }
  func.func @transform_5(%arg0: i32) -> (i32, i32) {
    %c0_i32 = arith.constant 0 : i32
    %c0_i32_0 = arith.constant 0 : i32
    %c0_i32_1 = arith.constant 0 : i32
    return %c0_i32, %c0_i32_0 : i32, i32
  }
  func.func @transform_6(%arg0: i32) -> (i32, i32) {
    %c0_i32 = arith.constant 0 : i32
    %c0_i32_0 = arith.constant 0 : i32
    %c0_i32_1 = arith.constant 0 : i32
    return %c0_i32, %c0_i32_0 : i32, i32
  }
  func.func @transform_7(%arg0: i32) -> (i32, i32) {
    %c0_i32 = arith.constant 0 : i32
    %c0_i32_0 = arith.constant 0 : i32
    %c0_i32_1 = arith.constant 0 : i32
    return %c0_i32, %c0_i32_0 : i32, i32
  }
  func.func @transform_8(%arg0: i32) -> (i32, i32) {
    %c0_i32 = arith.constant 0 : i32
    %c0_i32_0 = arith.constant 0 : i32
    %c0_i32_1 = arith.constant 0 : i32
    return %c0_i32, %c0_i32_0 : i32, i32
  }
  func.func @transform_9(%arg0: i32) -> (i32, i32) {
    %c0_i32 = arith.constant 0 : i32
    %c0_i32_0 = arith.constant 0 : i32
    return %arg0, %c0_i32 : i32, i32
  }
}

</mosaic_0001>

<bundles_post_ra>
// kernel: tpu_custom_call.1
= control target key start
LH: loop header
LB: loop body
LE: loop exit
PB: predicated region body
PF: predicated region fallthrough
CT: control target
= control target key end

     0   :  { %s1559_s0 = inlined_call_operand.vmem [shape: f32[8,16], index: 0, kind: input, shape index: {}]   ;;  %s1560_s1 = inlined_call_operand.vmem [shape: f32[8,4], index: 1, kind: input, shape index: {}]   ;;  %s1561_s2 = inlined_call_operand.hbm [shape: bf16[16,400], index: 2, kind: input, shape index: {}]   ;;  %s1562_s3 = inlined_call_operand.hbm [shape: f32[1,400], index: 3, kind: input, shape index: {}]   ;;  %s1563_s4 = inlined_call_operand.hbm [shape: bf16[400,300], index: 4, kind: input, shape index: {}]   ;;  %s1564_s5 = inlined_call_operand.vmem [shape: bf16[4,300], index: 5, kind: input, shape index: {}]   ;;  %s1565_s6 = inlined_call_operand.vmem [shape: f32[1,300], index: 6, kind: input, shape index: {}]   ;;  %s1566_s7 = inlined_call_operand.vmem [shape: f32[1,300], index: 7, kind: input, shape index: {}]   ;;  %s1567_s8 = inlined_call_operand.<no memory space> [shape: f32[1,1], index: 8, kind: input, shape index: {}]   ;;  %s1568_s9 = inlined_call_operand.vmem [shape: f32[8,1], index: 9, kind: output, shape index: {}]  }
   0x1   :  { %v14_v0 = vstv %s1567_s8 }
   0x2   :  { %15 = vst [vmem:[#allocation2] sm:$0x1] %v14_v0 }
   0x3   :  { %16 = vsyncpa [#allocation4], 0 }
   0x4   :  { %17 = vsyncpa [#allocation6], 0  ;;  %s40_s13 = sshll.u32 %s1562_s3, 4  ;;  %s1430_s14 = smov [#allocation5]   ;;  %s41_s13 = int_to_ptr.hbm [resolvable:$true] %s40_s13 }
   0x5   :  { %s42_s15 = sshll.u32 %s1430_s14, 4  ;;  %s26_s18 = sshll.u32 %s1561_s2, 4  ;;  %s43_s15 = int_to_ptr.vmem [resolvable:$true] %s42_s15  ;;  %s27_s18 = int_to_ptr.hbm [resolvable:$true] %s26_s18 }
   0x6   :  { %45 = dma.hbm_to_vmem [thread:$0]  %s41_s13, 64, %s43_s15, [#allocation6]  }
   0x7   :  { %s1431_s19 = smov [#allocation3]   ;;  %s1432_s8 = smov 256  }
   0x8   :  { %s28_s20 = sshll.u32 %s1431_s19, 4  ;;  %s1433_s21 = smov 16   ;;  %s29_s20 = int_to_ptr.vmem [resolvable:$true] %s28_s20 }
   0x9   :  { %34 = dma.hbm_to_vmem [thread:$0]  %s27_s18, 512, %s29_s20, [#allocation4], %s1432_s8, %s1432_s8, %s1433_s21  }
   0xa   :  { %s50_s3 = sshll.u32 %s1563_s4, 4  ;;  %s1434_s24 = smov [#allocation7]   ;;  %s51_s3 = int_to_ptr.hbm [resolvable:$true] %s50_s3 }
   0xb   :  { %s52_s25 = sshll.u32 %s1434_s24, 4  ;;  %s1435_s26 = smov 192   ;;  %s53_s25 = int_to_ptr.vmem [resolvable:$true] %s52_s25 }
   0xc   :  { %s1436_s27 = smov 12  }
   0xd   :  { %58 = dma.hbm_to_vmem [thread:$0]  %s51_s3, 9600, %s53_s25, [#allocation6], %s1435_s26, %s1435_s26, %s1436_s27  }
   0xe   :  { %1426 = dma.done.wait [#allocation4], 512  }
   0xf   :  { %1427 = vsyncadd [#allocation4], 4294966784 }
  0x10   :  { %1428 = dma.done.wait [#allocation6], 9664  }
  0x11   :  { %1429 = vsyncadd [#allocation6], 4294957632  ;;  %v943_v1 = vld [vmem:[#allocation3] sm:$0xf]  ;;  %v1269_v2 = vld [vmem:[#allocation3 + $0xc] sm:$0xf0] }
  0x12   :  { %v1267_v3 = vld [vmem:[#allocation3 + $0x4] sm:$0xf]  ;;  %v944_v4 = vor.u32 %v1269_v2, %v943_v1  ;;  %v945_v5 = vld [vmem:[#allocation3 + $0x10] sm:$0xf0]  ;;  %v951_v6 = vld [vmem:[#allocation3 + $0x8] sm:$0xf] }
  0x13   :  { %v1270_v7 = vld [vmem:[#allocation3 + $0x14] sm:$0xf0]  ;;  %v948_v8 = vor.u32 %v1267_v3, %v945_v5  ;;  %v1268_v10 = vld [vmem:[#allocation3 + $0xc] sm:$0xf]  ;;  %v953_v11 = vld [vmem:[#allocation3 + $0x18] sm:$0xf0] }
  0x14   :  { %v952_v9 = vor.u32 %v1270_v7, %v951_v6  ;;  %v80_v12 = vld [vmem:[%s1559_s0] sm:$0xff]  ;;  %vm116_vm0 = vcmask 130048   ;;  %127 = vmatpush.bf16.msra.mxu0 %v944_v4  ;;  %v956_v13 = vor.u32 %v1268_v10, %v953_v11  ;;  %v1050_v15 = vld [vmem:[#allocation7 + $0xa8] sm:$0xf]  ;;  %v1290_v19 = vld [vmem:[#allocation7 + $0x98] sm:$0xf0] }
  0x15   :  { %v81_v14 = vpack.c.bf16 %v80_v12, %v80_v12  ;;  %v1293_v16 = vld [vmem:[#allocation7 + $0xb0] sm:$0xf0]  ;;  %v1038_v17 = vld [vmem:[#allocation7 + $0x90] sm:$0xf]  ;;  %140 = vmatpush.bf16.msra.mxu1 %v948_v8  ;;  %v1026_v22 = vld [vmem:[#allocation7 + $0x78] sm:$0xf] }
  0x16   :  { %153 = vmatpush.bf16.msra.mxu2 %v952_v9  ;;  %v1051_v18 = vor.u32 %v1293_v16, %v1050_v15  ;;  %166 = vmatpush.bf16.msra.mxu3 %v956_v13  ;;  %v282_v20 = vld [vmem:[%s1564_s5] sm:$0x3f]  ;;  %v1039_v21 = vor.u32 %v1290_v19, %v1038_v17  ;;  %v1287_v23 = vld [vmem:[#allocation7 + $0x80] sm:$0xf0]  ;;  %v1146_v24 = vld [vmem:[#allocation7 + $0x168] sm:$0xf] }
  0x17   :  { %957 = vmatmul.msk.bf16.vlgmr.msra.gmra.mxu0 %vm116_vm0, %v81_v14  ;;  %284 = vst [vmem:[#allocation1] ss:$4 sm:$0xff] %v282_v20  ;;  %v1317_v25 = vld [vmem:[#allocation7 + $0x170] sm:$0xf0]  ;;  %v1027_v26 = vor.u32 %v1287_v23, %v1026_v22  ;;  %vm292_vm1 = vcmask 1041408   ;;  %vm288_vm2 = vcmask 31744  }
  0x18   :  { %958 = vmatmul.msk.bf16.vlgmr.msra.gmra.mxu1 %vm116_vm0, %v81_v14  ;;  %v1014_v27 = vld [vmem:[#allocation7 + $0x60] sm:$0xf]  ;;  %v1284_v28 = vld [vmem:[#allocation7 + $0x68] sm:$0xf0]  ;;  %v1147_v29 = vor.u32 %v1317_v25, %v1146_v24  ;;  %v1134_v30 = vld [vmem:[#allocation7 + $0x150] sm:$0xf] }
  0x19   :  { %959 = vmatmul.msk.bf16.vlgmr.msra.gmra.mxu2 %vm116_vm0, %v81_v14  ;;  %960 = vmatmul.msk.bf16.vlgmr.msra.gmra.mxu3 %vm116_vm0, %v81_v14  ;;  %v1314_v31 = vld [vmem:[#allocation7 + $0x158] sm:$0xf0]  ;;  %v1002_v33 = vld [vmem:[#allocation7 + $0x48] sm:$0xf]  ;;  %v1015_v36 = vor.u32 %v1284_v28, %v1014_v27  ;;  %v1281_v37 = vld [vmem:[#allocation7 + $0x50] sm:$0xf0] }
  0x1a   :  { %741 = vmatpush.bf16.msrb.mxu3 %v1051_v18  ;;  %v1242_v39 = vld [vmem:[#allocation7 + $0x228] sm:$0xf]  ;;  %v1341_v41 = vld [vmem:[#allocation7 + $0x230] sm:$0xf0]  ;;  %v1135_v42 = vor.u32 %v1314_v31, %v1134_v30  ;;  %v990_v46 = vld [vmem:[#allocation7 + $0x30] sm:$0xf]  ;;  %v1003_v50 = vor.u32 %v1281_v37, %v1002_v33 }
  0x1b   :  { %v176_v43 = vld [vmem:[%s1560_s1] sm:$0xff]  ;;  %v1243_v45 = vor.u32 %v1341_v41, %v1242_v39  ;;  %v1311_v48 = vld [vmem:[#allocation7 + $0x140] sm:$0xf0]  ;;  %v1254_v49 = vld [vmem:[#allocation7 + $0x240] sm:$0xf]  ;;  %vm923_vm3 = vcmask 359424  }
  0x1c   :  { %v1122_v47 = vld [vmem:[#allocation7 + $0x138] sm:$0xf]  ;;  %v1344_v51 = vld [vmem:[#allocation7 + $0x248] sm:$0xf0]  ;;  %v1278_v54 = vld [vmem:[#allocation7 + $0x38] sm:$0xf0]  ;;  %v177_v55 = vpack.c.bf16 %v176_v43, %v176_v43 }
  0x1d   :  { %v1292_v52 = vld [vmem:[#allocation7 + $0xac] sm:$0xf]  ;;  %v1052_v53 = vld [vmem:[#allocation7 + $0xb4] sm:$0xf0]  ;;  %v1255_v56 = vor.u32 %v1344_v51, %v1254_v49  ;;  %v1230_v57 = vld [vmem:[#allocation7 + $0x210] sm:$0xf]  ;;  %v1123_v59 = vor.u32 %v1311_v48, %v1122_v47  ;;  %v991_v3 = vor.u32 %v1278_v54, %v990_v46 }
  0x1e   :  { %742 = vmatpush.bf16.msrb.mxu3 %v1039_v21  ;;  %v285_v32 = vld.sshfl [vmem:[#allocation1] sm:$0xff pattern:$0x73625140]  ;;  %v287_v34 = vld.sshfl [vmem:[#allocation1 + $0x10] sm:$0xff pattern:$0x73625140]  ;;  %v1055_v62 = vor.u32 %v1292_v52, %v1052_v53 }
  0x1f   :  { %v293_v35 = vsel %vm292_vm1, %v285_v32, 0  ;;  %v297_v38 = vsel %vm292_vm1, %v287_v34, 0  ;;  %v286_v40 = vld.sshfl [vmem:[#allocation1 + $0x8] sm:$0xff pattern:$0x73625140]  ;;  %vm933_vm4 = vcmask 7168  }
  0x20   :  { %306 = vmatpush.bf16.msrb.mxu0 %v293_v35  ;;  %332 = vmatpush.bf16.msrb.mxu2 %v297_v38  ;;  %v295_v44 = vsel %vm292_vm1, %v286_v40, 0  ;;  %v1338_v58 = vld [vmem:[#allocation7 + $0x218] sm:$0xf0]  ;;  %v1110_v60 = vld [vmem:[#allocation7 + $0x120] sm:$0xf] }
  0x21   :  { %319 = vmatpush.bf16.msrb.mxu1 %v295_v44  ;;  %v1308_v61 = vld [vmem:[#allocation7 + $0x128] sm:$0xf0]  ;;  %v1231_v63 = vor.u32 %v1338_v58, %v1230_v57  ;;  %v1289_v0 = vld [vmem:[#allocation7 + $0x94] sm:$0xf]  ;;  %v1040_v1 = vld [vmem:[#allocation7 + $0x9c] sm:$0xf0] }
  0x22   :  { %743 = vmatpush.bf16.msrb.mxu3 %v1027_v26  ;;  %v1218_v2 = vld [vmem:[#allocation7 + $0x1f8] sm:$0xf]  ;;  %v1335_v4 = vld [vmem:[#allocation7 + $0x200] sm:$0xf0]  ;;  %v1111_v8 = vor.u32 %v1308_v61, %v1110_v60  ;;  %v1098_v9 = vld [vmem:[#allocation7 + $0x108] sm:$0xf]  ;;  %v1043_v11 = vor.u32 %v1289_v0, %v1040_v1 }
  0x23   :  { %v978_v5 = vld [vmem:[#allocation7 + $0x18] sm:$0xf]  ;;  %v1275_v6 = vld [vmem:[#allocation7 + $0x20] sm:$0xf0]  ;;  %v1219_v7 = vor.u32 %v1335_v4, %v1218_v2  ;;  %v1305_v10 = vld [vmem:[#allocation7 + $0x110] sm:$0xf0] }
  0x24   :  { %754 = vmatpush.bf16.msra.mxu0 %v1147_v29  ;;  %787 = vmatpush.bf16.msra.mxu2 %v1255_v56  ;;  %v1286_v12 = vld [vmem:[#allocation7 + $0x7c] sm:$0xf]  ;;  %v1028_v13 = vld [vmem:[#allocation7 + $0x84] sm:$0xf0]  ;;  %v1206_v14 = vld [vmem:[#allocation7 + $0x1e0] sm:$0xf]  ;;  %v979_v16 = vor.u32 %v1275_v6, %v978_v5  ;;  %v1099_v23 = vor.u32 %v1305_v10, %v1098_v9 }
  0x25   :  { %767 = vmatpush.bf16.msra.mxu1 %v1243_v45  ;;  %v1332_v15 = vld [vmem:[#allocation7 + $0x1e8] sm:$0xf0]  ;;  %v966_v17 = vld [vmem:[#allocation7] sm:$0xf]  ;;  %v1148_v21 = vld [vmem:[#allocation7 + $0x174] sm:$0xf0]  ;;  %v1031_v26 = vor.u32 %v1286_v12, %v1028_v13 }
  0x26   :  { %744 = vmatpush.bf16.msrb.mxu3 %v1015_v36  ;;  %v1272_v18 = vld [vmem:[#allocation7 + $0x8] sm:$0xf0]  ;;  %v1207_v19 = vor.u32 %v1332_v15, %v1206_v14  ;;  %v1194_v22 = vld [vmem:[#allocation7 + $0x1c8] sm:$0xf]  ;;  %v1086_v24 = vld [vmem:[#allocation7 + $0xf0] sm:$0xf] }
  0x27   :  { %961 = vmatmul.msk.bf16.vlgmr.msrb.gmra.mxu0 %vm288_vm2, %v177_v55  ;;  %v1316_v20 = vld [vmem:[#allocation7 + $0x16c] sm:$0xf]  ;;  %v1302_v25 = vld [vmem:[#allocation7 + $0xf8] sm:$0xf0]  ;;  %v1329_v27 = vld [vmem:[#allocation7 + $0x1d0] sm:$0xf0]  ;;  %v967_v30 = vor.u32 %v1272_v18, %v966_v17 }
  0x28   :  { %755 = vmatpush.bf16.msra.mxu0 %v1135_v42  ;;  %962 = vmatmul.msk.bf16.vlgmr.msrb.gmra.mxu1 %vm288_vm2, %v177_v55  ;;  %v1283_v28 = vld [vmem:[#allocation7 + $0x64] sm:$0xf]  ;;  %v1016_v29 = vld [vmem:[#allocation7 + $0x6c] sm:$0xf0]  ;;  %v1195_v31 = vor.u32 %v1329_v27, %v1194_v22  ;;  %v1151_v32 = vor.u32 %v1316_v20, %v1148_v21  ;;  %v1087_v33 = vor.u32 %v1302_v25, %v1086_v24  ;;  %v1313_v34 = vld [vmem:[#allocation7 + $0x154] sm:$0xf] }
  0x29   :  { %768 = vmatpush.bf16.msra.mxu1 %v1231_v63  ;;  %963 = vmatmul.msk.bf16.vlgmr.msrb.gmra.mxu2 %vm288_vm2, %v177_v55  ;;  %v1136_v35 = vld [vmem:[#allocation7 + $0x15c] sm:$0xf0]  ;;  %v1019_v36 = vor.u32 %v1283_v28, %v1016_v29  ;;  %v1074_v37 = vld [vmem:[#allocation7 + $0xd8] sm:$0xf]  ;;  %v1299_v38 = vld [vmem:[#allocation7 + $0xe0] sm:$0xf0] }
  0x2a   :  { %745 = vmatpush.bf16.msrb.mxu3 %v1003_v50  ;;  %793 = vmatpush.bf16.msrb.mxu2 %v1055_v62  ;;  %v1139_v39 = vor.u32 %v1313_v34, %v1136_v35  ;;  %v1075_v40 = vor.u32 %v1299_v38, %v1074_v37  ;;  %v1310_v41 = vld [vmem:[#allocation7 + $0x13c] sm:$0xf]  ;;  %v1124_v42 = vld [vmem:[#allocation7 + $0x144] sm:$0xf0]  ;;  %v1062_v43 = vld [vmem:[#allocation7 + $0xc0] sm:$0xf] }
  0x2b   :  { %v1296_v44 = vld [vmem:[#allocation7 + $0xc8] sm:$0xf0]  ;;  %v1244_v46 = vld [vmem:[#allocation7 + $0x234] sm:$0xf0]  ;;  %v1127_v47 = vor.u32 %v1310_v41, %v1124_v42  ;;  %v1307_v49 = vld [vmem:[#allocation7 + $0x124] sm:$0xf] }
  0x2c   :  { %756 = vmatpush.bf16.msra.mxu0 %v1123_v59  ;;  %v1340_v45 = vld [vmem:[#allocation7 + $0x22c] sm:$0xf]  ;;  %v1063_v48 = vor.u32 %v1296_v44, %v1062_v43  ;;  %v1112_v50 = vld [vmem:[#allocation7 + $0x12c] sm:$0xf0]  ;;  %v1337_v52 = vld [vmem:[#allocation7 + $0x214] sm:$0xf] }
  0x2d   :  { %769 = vmatpush.bf16.msra.mxu1 %v1219_v7  ;;  %v1247_v51 = vor.u32 %v1340_v45, %v1244_v46  ;;  %v1232_v53 = vld [vmem:[#allocation7 + $0x21c] sm:$0xf0]  ;;  %v1115_v54 = vor.u32 %v1307_v49, %v1112_v50  ;;  %v1304_v55 = vld [vmem:[#allocation7 + $0x10c] sm:$0xf]  ;;  %v1100_v56 = vld [vmem:[#allocation7 + $0x114] sm:$0xf0] }
  0x2e   :  { %746 = vmatpush.bf16.msrb.mxu3 %v991_v3  ;;  %794 = vmatpush.bf16.msrb.mxu2 %v1043_v11  ;;  %v1235_v57 = vor.u32 %v1337_v52, %v1232_v53  ;;  %v1103_v58 = vor.u32 %v1304_v55, %v1100_v56  ;;  %v1301_v59 = vld [vmem:[#allocation7 + $0xf4] sm:$0xf]  ;;  %v1088_v60 = vld [vmem:[#allocation7 + $0xfc] sm:$0xf0]  ;;  %v1334_v62 = vld [vmem:[#allocation7 + $0x1fc] sm:$0xf] }
  0x2f   :  { %v1091_v61 = vor.u32 %v1301_v59, %v1088_v60  ;;  %v1220_v63 = vld [vmem:[#allocation7 + $0x204] sm:$0xf0]  ;;  %v1280_v1 = vld [vmem:[#allocation7 + $0x4c] sm:$0xf]  ;;  %v1004_v2 = vld [vmem:[#allocation7 + $0x54] sm:$0xf0] }
  0x30   :  { %757 = vmatpush.bf16.msra.mxu0 %v1111_v8  ;;  %v1223_v0 = vor.u32 %v1334_v62, %v1220_v63  ;;  %v1007_v3 = vor.u32 %v1280_v1, %v1004_v2  ;;  %v1182_v4 = vld [vmem:[#allocation7 + $0x1b0] sm:$0xf]  ;;  %v1326_v5 = vld [vmem:[#allocation7 + $0x1b8] sm:$0xf0]  ;;  %v1076_v8 = vld [vmem:[#allocation7 + $0xe4] sm:$0xf0] }
  0x31   :  { %770 = vmatpush.bf16.msra.mxu1 %v1207_v19  ;;  %v1183_v6 = vor.u32 %v1326_v5, %v1182_v4  ;;  %v1298_v7 = vld [vmem:[#allocation7 + $0xdc] sm:$0xf]  ;;  %v1331_v10 = vld [vmem:[#allocation7 + $0x1e4] sm:$0xf]  ;;  %v1208_v11 = vld [vmem:[#allocation7 + $0x1ec] sm:$0xf0] }
  0x32   :  { %747 = vmatpush.bf16.msrb.mxu3 %v979_v16  ;;  %795 = vmatpush.bf16.msrb.mxu2 %v1031_v26  ;;  %v1079_v9 = vor.u32 %v1298_v7, %v1076_v8  ;;  %v1211_v12 = vor.u32 %v1331_v10, %v1208_v11  ;;  %v1277_v13 = vld [vmem:[#allocation7 + $0x34] sm:$0xf]  ;;  %v992_v14 = vld [vmem:[#allocation7 + $0x3c] sm:$0xf0]  ;;  %v1170_v16 = vld [vmem:[#allocation7 + $0x198] sm:$0xf] }
  0x33   :  { %v995_v15 = vor.u32 %v1277_v13, %v992_v14  ;;  %v1323_v17 = vld [vmem:[#allocation7 + $0x1a0] sm:$0xf0]  ;;  %v1064_v20 = vld [vmem:[#allocation7 + $0xcc] sm:$0xf0]  ;;  %v1328_v22 = vld [vmem:[#allocation7 + $0x1cc] sm:$0xf] }
  0x34   :  { %758 = vmatpush.bf16.msra.mxu0 %v1099_v23  ;;  %v1171_v18 = vor.u32 %v1323_v17, %v1170_v16  ;;  %v1295_v19 = vld [vmem:[#allocation7 + $0xc4] sm:$0xf]  ;;  %v1196_v23 = vld [vmem:[#allocation7 + $0x1d4] sm:$0xf0]  ;;  %v1274_v25 = vld [vmem:[#allocation7 + $0x1c] sm:$0xf] }
  0x35   :  { %771 = vmatpush.bf16.msra.mxu1 %v1195_v31  ;;  %v1067_v21 = vor.u32 %v1295_v19, %v1064_v20  ;;  %v1199_v24 = vor.u32 %v1328_v22, %v1196_v23  ;;  %v980_v26 = vld [vmem:[#allocation7 + $0x24] sm:$0xf0]  ;;  %v1158_v27 = vld [vmem:[#allocation7 + $0x180] sm:$0xf]  ;;  %v1320_v28 = vld [vmem:[#allocation7 + $0x188] sm:$0xf0] }
  0x36   :  { %748 = vmatpush.bf16.msrb.mxu3 %v967_v30  ;;  %796 = vmatpush.bf16.msrb.mxu2 %v1019_v36  ;;  %v983_v29 = vor.u32 %v1274_v25, %v980_v26  ;;  %v1159_v30 = vor.u32 %v1320_v28, %v1158_v27  ;;  %v1325_v31 = vld [vmem:[#allocation7 + $0x1b4] sm:$0xf]  ;;  %v1271_v34 = vld [vmem:[#allocation7 + $0x4] sm:$0xf]  ;;  %v968_v35 = vld [vmem:[#allocation7 + $0xc] sm:$0xf0] }
  0x37   :  { %v971_v36 = vor.u32 %v1271_v34, %v968_v35  ;;  %v1343_v37 = vld [vmem:[#allocation7 + $0x244] sm:$0xf]  ;;  %v1256_v38 = vld [vmem:[#allocation7 + $0x24c] sm:$0xf0]  ;;  %v1172_v41 = vld [vmem:[#allocation7 + $0x1a4] sm:$0xf0] }
  0x38   :  { %759 = vmatpush.bf16.msra.mxu0 %v1087_v33  ;;  %v1319_v43 = vld [vmem:[#allocation7 + $0x184] sm:$0xf]  ;;  %v1160_v44 = vld [vmem:[#allocation7 + $0x18c] sm:$0xf0]  ;;  %v86_v46 = vld [vmem:[#allocation5] sm:$0xf] }
  0x39   :  { %772 = vmatpush.bf16.msra.mxu1 %v1183_v6  ;;  %v1163_v45 = vor.u32 %v1319_v43, %v1160_v44  ;;  %v1250_v52 = vld [vmem:[#allocation7 + $0x230] sm:$0xf]  ;;  %v1342_v53 = vld [vmem:[#allocation7 + $0x238] sm:$0xf0]  ;;  %v1262_v59 = vld [vmem:[#allocation7 + $0x248] sm:$0xf] }
  0x3a   :  { %806 = vmatpush.bf16.msra.mxu3 %v1151_v32  ;;  %797 = vmatpush.bf16.msrb.mxu2 %v1007_v3  ;;  %v1184_v32 = vld [vmem:[#allocation7 + $0x1bc] sm:$0xf0]  ;;  %v1345_v60 = vld [vmem:[#allocation7 + $0x250] sm:$0xf0]  ;;  %v91_v62 = vperm.slane %v86_v46, 3 }
  0x3b   :  { %v1187_v33 = vor.u32 %v1325_v31, %v1184_v32  ;;  %v1238_v63 = vld [vmem:[#allocation7 + $0x218] sm:$0xf]  ;;  %v1263_v1 = vor.u32 %v1345_v60, %v1262_v59  ;;  %v1058_v8 = vld [vmem:[#allocation7 + $0xb0] sm:$0xf]  ;;  %v1226_v14 = vld [vmem:[#allocation7 + $0x200] sm:$0xf] }
  0x3c   :  { %760 = vmatpush.bf16.msra.mxu0 %v1075_v40  ;;  %v1322_v40 = vld [vmem:[#allocation7 + $0x19c] sm:$0xf]  ;;  %v1154_v10 = vld [vmem:[#allocation7 + $0x170] sm:$0xf]  ;;  %v1046_v22 = vld [vmem:[#allocation7 + $0x98] sm:$0xf] }
  0x3d   :  { %773 = vmatpush.bf16.msra.mxu1 %v1171_v18  ;;  %v1175_v42 = vor.u32 %v1322_v40, %v1172_v41  ;;  %v1291_v23 = vld [vmem:[#allocation7 + $0xa0] sm:$0xf0]  ;;  %v1214_v27 = vld [vmem:[#allocation7 + $0x1e8] sm:$0xf]  ;;  %v1333_v28 = vld [vmem:[#allocation7 + $0x1f0] sm:$0xf0] }
  0x3e   :  { %807 = vmatpush.bf16.msra.mxu3 %v1139_v39  ;;  %798 = vmatpush.bf16.msrb.mxu2 %v995_v15  ;;  %v1259_v39 = vor.u32 %v1343_v37, %v1256_v38  ;;  %v1336_v15 = vld [vmem:[#allocation7 + $0x208] sm:$0xf0]  ;;  %v1315_v26 = vld [vmem:[#allocation7 + $0x160] sm:$0xf0]  ;;  %v1034_v34 = vld [vmem:[#allocation7 + $0x80] sm:$0xf] }
  0x3f   :  { %v1288_v35 = vld [vmem:[#allocation7 + $0x88] sm:$0xf0]  ;;  %v1330_v40 = vld [vmem:[#allocation7 + $0x1d8] sm:$0xf0]  ;;  %v1022_v44 = vld [vmem:[#allocation7 + $0x68] sm:$0xf] }
  0x40   :  { %761 = vmatpush.bf16.msra.mxu0 %v1063_v48  ;;  %v89_v48 = vperm.slane %v86_v46, 1  ;;  %v1312_v37 = vld [vmem:[#allocation7 + $0x148] sm:$0xf0]  ;;  %v1035_v41 = vor.u32 %v1288_v35, %v1034_v34  ;;  %v1178_v60 = vld [vmem:[#allocation7 + $0x1a0] sm:$0xf] }
  0x41   :  { %774 = vmatpush.bf16.msra.mxu1 %v1159_v30  ;;  %v1047_v30 = vor.u32 %v1291_v23, %v1046_v22  ;;  %v1273_v22 = vld [vmem:[#allocation7 + $0x10] sm:$0xf0]  ;;  %v1070_v23 = vld [vmem:[#allocation7 + $0xc8] sm:$0xf] }
  0x42   :  { %808 = vmatpush.bf16.msra.mxu3 %v1127_v47  ;;  %799 = vmatpush.bf16.msrb.mxu2 %v983_v29  ;;  %v88_v47 = vperm.slane %v86_v46, 0 }
  0x44   :  { %819 = vmatpush.bf16.msrb.mxu0 %v1247_v51 }
  0x45   :  { %839 = vmatpush.bf16.msrb.mxu1 %v1259_v39  ;;  %v1202_v39 = vld [vmem:[#allocation7 + $0x1d0] sm:$0xf] }
  0x46   :  { %809 = vmatpush.bf16.msra.mxu3 %v1115_v54  ;;  %800 = vmatpush.bf16.msrb.mxu2 %v971_v36  ;;  %v1130_v36 = vld [vmem:[#allocation7 + $0x140] sm:$0xf] }
  0x47   :  { %v1131_v43 = vor.u32 %v1312_v37, %v1130_v36 }
  0x48   :  { %820 = vmatpush.bf16.msrb.mxu0 %v1235_v57  ;;  %v90_v57 = vperm.slane %v86_v46, 2  ;;  %v1203_v46 = vor.u32 %v1330_v40, %v1202_v39 }
  0x4a   :  { %810 = vmatpush.bf16.msra.mxu3 %v1103_v58  ;;  %v1251_v58 = vor.u32 %v1342_v53, %v1250_v52 }
  0x4c   :  { %821 = vmatpush.bf16.msrb.mxu0 %v1223_v0  ;;  %v1339_v0 = vld [vmem:[#allocation7 + $0x220] sm:$0xf0] }
  0x4d   :  { %v1239_v7 = vor.u32 %v1339_v0, %v1238_v63 }
  0x4e   :  { %811 = vmatpush.bf16.msra.mxu3 %v1091_v61 }
  0x50   :  { %822 = vmatpush.bf16.msrb.mxu0 %v1211_v12  ;;  %v1318_v12 = vld [vmem:[#allocation7 + $0x178] sm:$0xf0] }
  0x51   :  { %v1155_v20 = vor.u32 %v1318_v12, %v1154_v10 }
  0x52   :  { %812 = vmatpush.bf16.msra.mxu3 %v1079_v9  ;;  %v1294_v9 = vld [vmem:[#allocation7 + $0xb8] sm:$0xf0] }
  0x53   :  { %v1059_v18 = vor.u32 %v1294_v9, %v1058_v8  ;;  %v1166_v8 = vld [vmem:[#allocation7 + $0x188] sm:$0xf]  ;;  %v1321_v9 = vld [vmem:[#allocation7 + $0x190] sm:$0xf0] }
  0x54   :  { %823 = vmatpush.bf16.msrb.mxu0 %v1199_v24  ;;  %v1142_v24 = vld [vmem:[#allocation7 + $0x158] sm:$0xf] }
  0x55   :  { %v1143_v32 = vor.u32 %v1315_v26, %v1142_v24  ;;  %v1297_v24 = vld [vmem:[#allocation7 + $0xd0] sm:$0xf0] }
  0x56   :  { %813 = vmatpush.bf16.msra.mxu3 %v1067_v21  ;;  %v1227_v21 = vor.u32 %v1336_v15, %v1226_v14  ;;  %v1276_v14 = vld [vmem:[#allocation7 + $0x28] sm:$0xf0]  ;;  %v1167_v15 = vor.u32 %v1321_v9, %v1166_v8 }
  0x58   :  { %824 = vmatpush.bf16.msrb.mxu0 %v1187_v33  ;;  %v1215_v33 = vor.u32 %v1333_v28, %v1214_v27  ;;  %v1071_v27 = vor.u32 %v1297_v24, %v1070_v23 }
  0x5c   :  { %825 = vmatpush.bf16.msrb.mxu0 %v1175_v42 }
  0x60   :  { %826 = vmatpush.bf16.msrb.mxu0 %v1163_v45  ;;  %v1285_v45 = vld [vmem:[#allocation7 + $0x70] sm:$0xf0] }
  0x94   :  { %v129_v49 = vpop.f32.mrf.mxu0 }
  0x95   :  { %v130_v50 = vadd.f32 %v129_v49, %v88_v47  ;;  %v142_v51 = vpop.f32.mrf.mxu1  ;;  %v1118_v47 = vld [vmem:[#allocation7 + $0x128] sm:$0xf]  ;;  %v1190_v49 = vld [vmem:[#allocation7 + $0x1b8] sm:$0xf] }
  0x96   :  { %v143_v54 = vadd.f32 %v142_v51, %v89_v48  ;;  %v1309_v48 = vld [vmem:[#allocation7 + $0x130] sm:$0xf0]  ;;  %v1023_v51 = vor.u32 %v1285_v45, %v1022_v44 }
  0x97   :  { %v172_v55 = vmax.f32 %v130_v50, 0.0  ;;  %v1327_v50 = vld [vmem:[#allocation7 + $0x1c0] sm:$0xf0]  ;;  %v1119_v53 = vor.u32 %v1309_v48, %v1118_v47 }
  0x98   :  { %v173_v56 = vmax.f32 %v143_v54, 0.0  ;;  %v1010_v54 = vld [vmem:[#allocation7 + $0x50] sm:$0xf] }
  0x99   :  { %v1518_v61 = vpack.c.bf16 %v172_v55, %v172_v55  ;;  %v1282_v55 = vld [vmem:[#allocation7 + $0x58] sm:$0xf0] }
  0x9a   :  { %v1520_v2 = vpack.c.bf16 %v173_v56, %v173_v56  ;;  %v1191_v56 = vor.u32 %v1327_v50, %v1190_v49  ;;  %v1011_v63 = vor.u32 %v1282_v55, %v1010_v54 }
  0x9b   :  { %749 = vmatmul.bf16.vlgmr.msrb.gmra.mxu3 %v1518_v61 }
  0x9c   :  { %v155_v3 = vpop.f32.mrf.mxu2  ;;  %v168_v5 = vpop.f32.mrf.mxu3  ;;  %762 = vmatmul.bf16.vlgmr.msra.gmra.mxu0 %v1520_v2  ;;  %871 = vmatpush.bf16.msrb.mxu3 %v1251_v58  ;;  %v1306_v58 = vld [vmem:[#allocation7 + $0x118] sm:$0xf0] }
  0x9d   :  { %v156_v4 = vadd.f32 %v155_v3, %v90_v57  ;;  %v131_v6 = vpop.f32.mrf.mxu0  ;;  %v169_v11 = vadd.f32 %v168_v5, %v91_v62  ;;  %v144_v13 = vpop.f32.mrf.mxu1  ;;  %891 = vmatpush.bf16.msra.mxu0 %v1263_v1  ;;  %v1106_v57 = vld [vmem:[#allocation7 + $0x110] sm:$0xf]  ;;  %v1324_v62 = vld [vmem:[#allocation7 + $0x1a8] sm:$0xf0]  ;;  %v998_v3 = vld [vmem:[#allocation7 + $0x38] sm:$0xf] }
  0x9e   :  { %v1107_v1 = vor.u32 %v1306_v58, %v1106_v57  ;;  %v1179_v5 = vor.u32 %v1324_v62, %v1178_v60  ;;  %v1094_v6 = vld [vmem:[#allocation7 + $0xf8] sm:$0xf]  ;;  %v986_v13 = vld [vmem:[#allocation7 + $0x20] sm:$0xf] }
  0x9f   :  { %v174_v16 = vmax.f32 %v156_v4, 0.0  ;;  %v175_v17 = vmax.f32 %v169_v11, 0.0  ;;  %v1279_v4 = vld [vmem:[#allocation7 + $0x40] sm:$0xf0] }
  0xa0   :  { %872 = vmatpush.bf16.msrb.mxu3 %v1239_v7  ;;  %v1303_v7 = vld [vmem:[#allocation7 + $0x100] sm:$0xf0]  ;;  %v999_v10 = vor.u32 %v1279_v4, %v998_v3  ;;  %v911_v3 = vld [vmem:[%s1566_s7] sm:$0x7] }
  0xa1   :  { %v1524_v19 = vpack.c.bf16 %v174_v16, %v174_v16  ;;  %v1526_v25 = vpack.c.bf16 %v175_v17, %v175_v17  ;;  %v1095_v12 = vor.u32 %v1303_v7, %v1094_v6  ;;  %v1082_v16 = vld [vmem:[#allocation7 + $0xe0] sm:$0xf]  ;;  %v1300_v17 = vld [vmem:[#allocation7 + $0xe8] sm:$0xf0]  ;;  %v913_v8 = vperm.slane %v911_v3, 0 }
  0xa3   :  { %775 = vmatmul.bf16.vlgmr.msra.gmra.mxu1 %v1524_v19  ;;  %1264 = vmatmul.msk.bf16.vlgmr.msra.gmra.mxu2 %vm116_vm0, %v1526_v25 }
  0xa4   :  { %v157_v29 = vpop.f32.mrf.mxu2  ;;  %845 = vmatpush.bf16.msra.mxu1 %v1059_v18  ;;  %v170_v31 = vpop.f32.mrf.mxu3  ;;  %858 = vmatpush.bf16.msra.mxu2 %v1155_v20  ;;  %v987_v18 = vor.u32 %v1276_v14, %v986_v13  ;;  %v1083_v20 = vor.u32 %v1300_v17, %v1082_v16 }
  0xa5   :  { %873 = vmatpush.bf16.msrb.mxu3 %v1227_v21  ;;  %v1531_v38 = vpop.f32.mrf.mxu0  ;;  %v1533_v42 = vpop.f32.mrf.mxu1  ;;  %v974_v21 = vld [vmem:[#allocation7 + $0x8] sm:$0xf] }
  0xa6   :  { %v975_v26 = vor.u32 %v1273_v22, %v974_v21 }
  0xa8   :  { %846 = vmatpush.bf16.msra.mxu1 %v1047_v30  ;;  %859 = vmatpush.bf16.msra.mxu2 %v1143_v32 }
  0xa9   :  { %874 = vmatpush.bf16.msrb.mxu3 %v1215_v33 }
  0xab   :  { %814 = vmatmul.bf16.vlgmr.msra.gmra.mxu3 %v1520_v2 }
  0xac   :  { %847 = vmatpush.bf16.msra.mxu1 %v1035_v41  ;;  %v1536_v52 = vpop.f32.mrf.mxu2  ;;  %860 = vmatpush.bf16.msra.mxu2 %v1131_v43 }
  0xad   :  { %827 = vmatmul.bf16.vlgmr.msrb.gmra.mxu0 %v1524_v19  ;;  %875 = vmatpush.bf16.msrb.mxu3 %v1203_v46  ;;  %v310_v59 = vpop.f32.mrf.mxu0  ;;  %v323_v0 = vpop.f32.mrf.mxu1 }
  0xb0   :  { %848 = vmatpush.bf16.msra.mxu1 %v1023_v51  ;;  %861 = vmatpush.bf16.msra.mxu2 %v1119_v53  ;;  %v897_v51 = vld [vmem:[%s1565_s6] sm:$0x7] }
  0xb1   :  { %876 = vmatpush.bf16.msrb.mxu3 %v1191_v56  ;;  %v900_v55 = vperm.slane %v897_v51, 1 }
  0xb3   :  { %1265 = vmatmul.msk.bf16.vlgmr.msrb.gmra.mxu1 %vm116_vm0, %v1526_v25  ;;  %801 = vmatmul.bf16.vlgmr.msrb.gmra.mxu2 %v1518_v61 }
  0xb4   :  { %849 = vmatpush.bf16.msra.mxu1 %v1011_v63  ;;  %v336_v11 = vpop.f32.mrf.mxu2  ;;  %862 = vmatpush.bf16.msra.mxu2 %v1107_v1  ;;  %v901_v1 = vperm.slane %v897_v51, 2 }
  0xb5   :  { %877 = vmatpush.bf16.msrb.mxu3 %v1179_v5  ;;  %v914_v5 = vperm.slane %v911_v3, 1 }
  0xb8   :  { %850 = vmatpush.bf16.msra.mxu1 %v999_v10  ;;  %863 = vmatpush.bf16.msra.mxu2 %v1095_v12  ;;  %v915_v10 = vperm.slane %v911_v3, 2 }
  0xb9   :  { %878 = vmatpush.bf16.msrb.mxu3 %v1167_v15 }
  0xbc   :  { %851 = vmatpush.bf16.msra.mxu1 %v987_v18  ;;  %864 = vmatpush.bf16.msra.mxu2 %v1083_v20  ;;  %v1353_v18 = vld [vmem:[#allocation2] ss:$0 sm:$0xff] }
  0xbd   :  { %879 = vmatmul.bf16.vlgmr.msrb.gmra.mxu3 %v1524_v19  ;;  %1266 = vmatmul.msk.bf16.vlgmr.msra.gmra.mxu0 %vm116_vm0, %v1526_v25 }
  0xc0   :  { %852 = vmatpush.bf16.msra.mxu1 %v975_v26  ;;  %865 = vmatpush.bf16.msra.mxu2 %v1071_v27 }
  0xc3   :  { %853 = vmatmul.bf16.vlgmr.msra.gmra.mxu1 %v1518_v61  ;;  %866 = vmatmul.bf16.vlgmr.msra.gmra.mxu2 %v1520_v2 }
 0x119   :  { %v763_v28 = vpop.f32.mrf.mxu0 }
 0x11e   :  { %v750_v29 = vpop.f32.mrf.mxu3 }
 0x11f   :  { %v751_v61 = vadd.f32 %v750_v29, %v1531_v38 }
 0x120   :  { %v776_v30 = vpop.f32.mrf.mxu1 }
 0x121   :  { %v765_v31 = vpop.f32.mrf.mxu0  ;;  %v764_v45 = vadd.f32 %v763_v28, %v751_v61 }
 0x123   :  { %v777_v50 = vadd.f32 %v776_v30, %v764_v45 }
 0x126   :  { %v789_v32 = vpop.f32.mrf.mxu2  ;;  %v752_v33 = vpop.f32.mrf.mxu3 }
 0x127   :  { %v790_v56 = vadd.f32 %v789_v32, %v777_v50 }
 0x128   :  { %v778_v34 = vpop.f32.mrf.mxu1 }
 0x12a   :  { %v828_v35 = vpop.f32.mrf.mxu0 }
 0x12e   :  { %v791_v36 = vpop.f32.mrf.mxu2  ;;  %v815_v19 = vpop.f32.mrf.mxu3 }
 0x130   :  { %v841_v37 = vpop.f32.mrf.mxu1 }
 0x132   :  { %v830_v39 = vpop.f32.mrf.mxu0 }
 0x136   :  { %v802_v40 = vpop.f32.mrf.mxu2  ;;  %v817_v25 = vpop.f32.mrf.mxu3 }
 0x137   :  { %v803_v41 = vadd.f32 %v802_v40, %v1533_v42  ;;  %v899_v42 = vperm.slane %v897_v51, 0 }
 0x138   :  { %v843_v43 = vpop.f32.mrf.mxu1 }
 0x139   :  { %v816_v2 = vadd.f32 %v815_v19, %v803_v41  ;;  %v905_v63 = vadd.f32 %v899_v42, %v790_v56 }
 0x13a   :  { %v893_v44 = vpop.f32.mrf.mxu0 }
 0x13b   :  { %v829_v46 = vadd.f32 %v828_v35, %v816_v2  ;;  %v908_v7 = vmax.f32 %v905_v63, 0.0 }
 0x13d   :  { %v842_v53 = vadd.f32 %v841_v37, %v829_v46  ;;  %v919_v13 = vmul.f32 %v913_v8, %v908_v7 }
 0x13e   :  { %v804_v47 = vpop.f32.mrf.mxu2 }
 0x13f   :  { %v906_v58 = vadd.f32 %v900_v55, %v842_v53 }
 0x140   :  { %v854_v48 = vpop.f32.mrf.mxu1  ;;  %v880_v49 = vpop.f32.mrf.mxu3 }
 0x141   :  { %v855_v57 = vadd.f32 %v854_v48, %v1536_v52  ;;  %v909_v4 = vmax.f32 %v906_v58, 0.0 }
 0x142   :  { %v895_v54 = vpop.f32.mrf.mxu0 }
 0x143   :  { %v920_v11 = vmul.f32 %v914_v5, %v909_v4 }
 0x145   :  { %v922_v15 = vadd.f32 %v920_v11, %v919_v13 }
 0x146   :  { %v867_v38 = vpop.f32.mrf.mxu2 }
 0x147   :  { %v868_v59 = vadd.f32 %v867_v38, %v855_v57 }
 0x148   :  { %v856_v60 = vpop.f32.mrf.mxu1  ;;  %v882_v62 = vpop.f32.mrf.mxu3 }
 0x149   :  { %v881_v0 = vadd.f32 %v880_v49, %v868_v59 }
 0x14b   :  { %v894_v6 = vadd.f32 %v893_v44, %v881_v0 }
 0x14d   :  { %v907_v9 = vadd.f32 %v901_v1, %v894_v6 }
 0x14e   :  { %v869_v52 = vpop.f32.mrf.mxu2 }
 0x14f   :  { %v910_v12 = vmax.f32 %v907_v9, 0.0 }
 0x151   :  { %v921_v14 = vmul.f32 %v915_v10, %v910_v12 }
 0x153   :  { %v924_v16 = vsel %vm923_vm3, %v921_v14, 0.0 }
 0x154   :  { %v925_v17 = vadd.f32 %v924_v16, %v922_v15 }
 0x156   :  { %926 = vadd.xlane.f32.xlu0 %v925_v17 }
 0x1c9   :  { %v927_v20 = vpop.xlane.xlu0 %926 }
 0x1ca   :  { %v932_v21 = vadd.f32 %v1353_v18, %v927_v20 }
 0x1cc   :  { %934 = vst.msk [vmem:[%s1568_s9] sm:$0xff] %vm933_vm4, %v932_v21 }
 0x1cd   :  { %939 = vsyncpa [#allocation4], 1 }
 0x1ce   :  { %940 = vsyncpa [#allocation6], 1 }

</bundles_post_ra>
